<compile_context>
chip_gen: v7x
topology: tpu7x:2x2x1
jax: 0.10.0
libtpu: 0.0.40
codegen_flags: <defaults>
</compile_context>

<pallas_src>
import jax
import jax.numpy as jnp
from jax import lax
from jax.experimental import pallas as pl
from jax.experimental.pallas import tpu as pltpu


def sm_loss_kernel(msg_ref, rsp_ref, loss_ref, corr_ref,
                   m_sc, l_sc, sxy_sc, amax_sc):
    qi = pl.program_id(0)          # query-row tile
    ki = pl.program_id(1)          # kv (candidate) tile -- reduction axis
    nk = pl.num_programs(1)
    T = msg_ref.shape[0]           # tile edge (== kv tile edge)

    # (T, T) score tile, transposed layout: s[j_local, i_local] = <msg_i, rsp_j>.
    # dot_general contracts the last dims of both operands -> no transpose copy.
    s = lax.dot_general(
        rsp_ref[...], msg_ref[...],
        dimension_numbers=(((1,), (1,)), ((), ())),
        preferred_element_type=jnp.float32,
    )

    @pl.when(ki == 0)
    def _init():
        m_sc[...] = jnp.full_like(m_sc, -jnp.inf)
        l_sc[...] = jnp.zeros_like(l_sc)
        amax_sc[...] = jnp.zeros_like(amax_sc)

    # Single LOCAL (T, 1) int32 iota -- the only per-step index tensor.
    local_ids = lax.broadcasted_iota(jnp.int32, (T, 1), 0)

    # Per-query (lane-dense) tile statistics.
    tile_max = jnp.max(s, axis=0, keepdims=True)                       # (1, T)
    # First-occurrence argmax within the tile = smallest local index at max.
    tile_amax_local = jnp.min(jnp.where(s == tile_max, local_ids, T),
                              axis=0, keepdims=True)                   # (1, T) i32

    # Online logsumexp + online (first-occurrence) argmax update.
    m_prev = m_sc[...]
    m_new = jnp.maximum(m_prev, tile_max)
    # TODO(synk): optional bf16 exp on v6e/v7x EUP (not done: v5e EUP has no bf16).
    l_sc[...] = (l_sc[...] * jnp.exp(m_prev - m_new)
                 + jnp.sum(jnp.exp(s - m_new), axis=0, keepdims=True))
    amax_sc[...] = jnp.where(tile_max > m_prev,
                             tile_amax_local + ki * T, amax_sc[...])
    m_sc[...] = m_new

    # Matched-pair score s_x_y: diagonal of the global score matrix; the
    # diagonal entries for query tile qi live in the kv tile ki == qi.
    @pl.when(ki == qi)
    def _diag():
        col = lax.broadcasted_iota(jnp.int32, (1, T), 1)
        sxy_sc[...] = jnp.sum(jnp.where(local_ids == col, s, 0.0),
                              axis=0, keepdims=True)                   # (1, T)

    # Finalize after the last kv tile.
    @pl.when(ki == nk - 1)
    def _fin():
        lse = m_sc[...] + jnp.log(l_sc[...])                           # (1, T)
        loss_ref[0] = lse - sxy_sc[...]
        q_ids = lax.broadcasted_iota(jnp.int32, (1, T), 1) + qi * T
        corr_ref[0] = (amax_sc[...] == q_ids).astype(jnp.float32)


def _vmem_capacity_bytes():
    try:
        return int(pltpu.get_tpu_info().vmem_capacity_bytes)
    except Exception:
        return 64 * 1024 * 1024   # conservative (v7x per-TC size)


def _pick_tile(B, D, itemsize, vmem_bytes):
    """Largest tile T dividing B that fits the VMEM budget and keeps nq >= 2."""
    budget = int(vmem_bytes * 0.75)

    def fits(t):
        inputs = 2 * 2 * t * D * itemsize   # msg + rsp, double-buffered
        temps = 5 * t * t * 4               # (T, T) f32 score/exp temporaries
        return inputs + temps <= budget

    # Keep nq >= 2 so the parallel q axis shards across both v7x TensorCores.
    cap = min(B // 2, 1024) if B >= 16 else B
    for t in range(cap, 7, -1):
        if B % t == 0 and t % 8 == 0 and fits(t):
            return t
    # TODO(synk): pad prime-ish batches to a multiple of 8 instead of one full tile.
    return B


def sm_loss(msg_enc, rsp_enc, *, tile=None, compute_dtype=None):
    """Returns {'loss': [B] float32, 'precision': scalar float32}.

    compute_dtype: optionally cast inputs (e.g. jnp.bfloat16) before the kernel;
    all softmax/log math stays float32 (MXU accumulates in f32).
    """
    assert msg_enc.shape == rsp_enc.shape
    B, D = msg_enc.shape
    if compute_dtype is not None:
        msg_enc = msg_enc.astype(compute_dtype)
        rsp_enc = rsp_enc.astype(compute_dtype)
    itemsize = msg_enc.dtype.itemsize

    vmem_bytes = _vmem_capacity_bytes()
    T = _pick_tile(B, D, itemsize, vmem_bytes) if tile is None else tile
    assert B % T == 0 and (T % 8 == 0 or T == B)
    nq = B // T

    loss3d, corr3d = pl.pallas_call(
        sm_loss_kernel,
        out_shape=(
            jax.ShapeDtypeStruct((nq, 1, T), jnp.float32),   # loss (lane-dense)
            jax.ShapeDtypeStruct((nq, 1, T), jnp.float32),   # per-row correct flag
        ),
        grid_spec=pltpu.PrefetchScalarGridSpec(
            num_scalar_prefetch=0,
            grid=(nq, nq),
            in_specs=[
                pl.BlockSpec((T, D), lambda qi, ki: (qi, 0)),   # msg rows
                pl.BlockSpec((T, D), lambda qi, ki: (ki, 0)),   # rsp (kv) rows
            ],
            out_specs=(
                pl.BlockSpec((1, 1, T), lambda qi, ki: (qi, 0, 0)),
                pl.BlockSpec((1, 1, T), lambda qi, ki: (qi, 0, 0)),
            ),
            scratch_shapes=[
                pltpu.VMEM((1, T), jnp.float32),   # running row max
                pltpu.VMEM((1, T), jnp.float32),   # running sum of exp
                pltpu.VMEM((1, T), jnp.float32),   # diagonal score s_x_y
                pltpu.VMEM((1, T), jnp.int32),     # running argmax index (exact)
            ],
        ),
        compiler_params=pltpu.CompilerParams(
            dimension_semantics=("parallel", "arbitrary"),
            vmem_limit_bytes=int(vmem_bytes * 0.8),
        ),
        cost_estimate=pl.CostEstimate(
            flops=2 * B * B * D,
            transcendentals=B * B,
            bytes_accessed=int(B * D * itemsize        # msg, once per q tile
                               + nq * B * D * itemsize  # rsp, streamed per q tile
                               + 2 * B * 4),            # outputs
        ),
    )(msg_enc, rsp_enc)

    return {"loss": loss3d.reshape(B), "precision": jnp.mean(corr3d)}


def _reference(msg, rsp):
    s = msg @ rsp.T
    s_xy = jnp.sum(msg * rsp, axis=1)
    lse = jax.scipy.special.logsumexp(s, axis=1)
    loss = lse - s_xy
    prec = jnp.mean(
        (jnp.argmax(s, axis=1) == jnp.arange(s.shape[0])).astype(jnp.float32)
    )
    return loss, prec


if __name__ == "__main__":
    key = jax.random.PRNGKey(0)
    k1, k2, k3, k4 = jax.random.split(key, 4)

    # Small case (module layout: [batch_size, enc_out_dim]) -- single tile.
    B1, D1 = 8, 32
    msg1 = jax.random.normal(k1, (B1, D1), dtype=jnp.float32)
    rsp1 = jax.random.normal(k2, (B1, D1), dtype=jnp.float32)
    out1 = sm_loss(msg1, rsp1)
    jax.block_until_ready(out1["loss"])
    jax.block_until_ready(out1["precision"])
    ref_loss1, ref_prec1 = _reference(msg1, rsp1)
    assert jnp.allclose(out1["loss"], ref_loss1, atol=1e-4, rtol=1e-4)
    assert jnp.allclose(out1["precision"], ref_prec1, atol=1e-6)

    # Multi-tile case: exercises the online logsumexp / argmax / diag carry
    # across kv tiles and multiple query tiles (grid = (4, 4)).
    B2, D2 = 32, 32
    msg2 = jax.random.normal(k3, (B2, D2), dtype=jnp.float32)
    rsp2 = jax.random.normal(k4, (B2, D2), dtype=jnp.float32)
    out2 = sm_loss(msg2, rsp2, tile=8)
    jax.block_until_ready(out2["loss"])
    ref_loss2, ref_prec2 = _reference(msg2, rsp2)
    assert jnp.allclose(out2["loss"], ref_loss2, atol=1e-4, rtol=1e-4)
    assert jnp.allclose(out2["precision"], ref_prec2, atol=1e-6)

    # bf16 input-cast path (halved HBM traffic, fast MXU path); compared against
    # a reference evaluated on the same bf16-rounded inputs.
    msg2b = msg2.astype(jnp.bfloat16).astype(jnp.float32)
    rsp2b = rsp2.astype(jnp.bfloat16).astype(jnp.float32)
    ref_loss3, ref_prec3 = _reference(msg2b, rsp2b)
    out3 = sm_loss(msg2, rsp2, tile=16, compute_dtype=jnp.bfloat16)
    jax.block_until_ready(out3["loss"])
    assert jnp.allclose(out3["loss"], ref_loss3, atol=5e-3, rtol=5e-3)
    assert jnp.allclose(out3["precision"], ref_prec3, atol=1e-6)

    print("KERNEL_OK")
</pallas_src>

<mosaic_0001>
module attributes {stable_mosaic.version = 11 : i64} {
  func.func @sm_loss_kernel(%arg0: i32, %arg1: i32, %arg2: memref<8x32xf32, #tpu.memory_space<vmem>>, %arg3: memref<8x32xf32, #tpu.memory_space<vmem>>, %arg4: memref<1x1x8xf32, #tpu.memory_space<vmem>>, %arg5: memref<1x1x8xf32, #tpu.memory_space<vmem>>, %arg6: memref<1x8xf32, #tpu.memory_space<vmem>>, %arg7: memref<1x8xf32, #tpu.memory_space<vmem>>, %arg8: memref<1x8xf32, #tpu.memory_space<vmem>>, %arg9: memref<1x8xi32, #tpu.memory_space<vmem>>) attributes {dimension_semantics = [#tpu.dimension_semantics<parallel>, #tpu.dimension_semantics<arbitrary>], iteration_bounds = array<i64: 1, 1>, scalar_prefetch = 0 : i64, scratch_operands = 4 : i64, tpu.core_type = #tpu.core_type<tc>, window_params = [{transform_indices = @transform_0, window_bounds = array<i64: 8, 32>}, {transform_indices = @transform_1, window_bounds = array<i64: 8, 32>}, {transform_indices = @transform_2, window_bounds = array<i64: 1, 1, 8>}, {transform_indices = @transform_3, window_bounds = array<i64: 1, 1, 8>}]} {
    %c0 = arith.constant 0 : index
    %c0_0 = arith.constant 0 : index
    %0 = vector.load %arg3[%c0, %c0_0] : memref<8x32xf32, #tpu.memory_space<vmem>>, vector<8x32xf32>
    %c0_1 = arith.constant 0 : index
    %c0_2 = arith.constant 0 : index
    %1 = vector.load %arg2[%c0_1, %c0_2] : memref<8x32xf32, #tpu.memory_space<vmem>>, vector<8x32xf32>
    %cst = arith.constant dense<0.000000e+00> : vector<8x8xf32>
    %2 = tpu.matmul %0, %1, %cst {dimension_numbers = #tpu.dot_dimension_numbers<[1], [1], [0], [0], [0, 0, 1, 0], [], []>} : vector<8x32xf32>, vector<8x32xf32>, vector<8x8xf32> -> vector<8x8xf32>
    %c0_i32 = arith.constant 0 : i32
    %3 = arith.cmpi eq, %arg1, %c0_i32 : i32
    %4 = arith.extui %3 : i1 to i32
    %c0_i32_3 = arith.constant 0 : i32
    %5 = arith.cmpi ne, %4, %c0_i32_3 : i32
    scf.if %5 {
      %cst_23 = arith.constant 0xFF800000 : f32
      %44 = vector.broadcast %cst_23 : f32 to vector<1x8xf32>
      %c0_24 = arith.constant 0 : index
      %c0_25 = arith.constant 0 : index
      %45 = vector.load %arg6[%c0_24, %c0_25] : memref<1x8xf32, #tpu.memory_space<vmem>>, vector<1x8xf32>
      tpu.vector_store %arg6[%c0_24, %c0_25], %44 {strides = array<i32>} : memref<1x8xf32, #tpu.memory_space<vmem>>, vector<1x8xf32>,
      %cst_26 = arith.constant 0.000000e+00 : f32
      %46 = vector.broadcast %cst_26 : f32 to vector<1x8xf32>
      %c0_27 = arith.constant 0 : index
      %c0_28 = arith.constant 0 : index
      %47 = vector.load %arg7[%c0_27, %c0_28] : memref<1x8xf32, #tpu.memory_space<vmem>>, vector<1x8xf32>
      tpu.vector_store %arg7[%c0_27, %c0_28], %46 {strides = array<i32>} : memref<1x8xf32, #tpu.memory_space<vmem>>, vector<1x8xf32>,
      %c0_i32_29 = arith.constant 0 : i32
      %48 = vector.broadcast %c0_i32_29 : i32 to vector<1x8xi32>
      %c0_30 = arith.constant 0 : index
      %c0_31 = arith.constant 0 : index
      %49 = vector.load %arg9[%c0_30, %c0_31] : memref<1x8xi32, #tpu.memory_space<vmem>>, vector<1x8xi32>
      tpu.vector_store %arg9[%c0_30, %c0_31], %48 {strides = array<i32>} : memref<1x8xi32, #tpu.memory_space<vmem>>, vector<1x8xi32>,
    } else {
    }
    %6 = tpu.iota {dimensions = array<i32: 0>} : vector<8x1xi32>
    %cst_4 = arith.constant dense<0xFF800000> : vector<8xf32>
    %7 = vector.multi_reduction <maximumf>, %2, %cst_4 [0] : vector<8x8xf32> to vector<8xf32>
    %8 = vector.shape_cast %7 : vector<8xf32> to vector<1x8xf32>
    %9 = vector.broadcast %8 : vector<1x8xf32> to vector<8x8xf32>
    %10 = arith.cmpf oeq, %2, %9 : vector<8x8xf32>
    %c8_i32 = arith.constant 8 : i32
    %11 = vector.shape_cast %6 : vector<8x1xi32> to vector<8x1xi32>
    %12 = vector.broadcast %11 : vector<8x1xi32> to vector<8x8xi32>
    %13 = vector.broadcast %c8_i32 : i32 to vector<8x8xi32>
    %14 = arith.select %10, %12, %13 : vector<8x8xi1>, vector<8x8xi32>
    %cst_5 = arith.constant dense<2147483647> : vector<8xi32>
    %15 = vector.multi_reduction <minsi>, %14, %cst_5 [0] : vector<8x8xi32> to vector<8xi32>
    %16 = vector.shape_cast %15 : vector<8xi32> to vector<1x8xi32>
    %c0_6 = arith.constant 0 : index
    %c0_7 = arith.constant 0 : index
    %17 = vector.load %arg6[%c0_6, %c0_7] : memref<1x8xf32, #tpu.memory_space<vmem>>, vector<1x8xf32>
    %18 = arith.maximumf %17, %8 : vector<1x8xf32>
    %c0_8 = arith.constant 0 : index
    %c0_9 = arith.constant 0 : index
    %19 = vector.load %arg7[%c0_8, %c0_9] : memref<1x8xf32, #tpu.memory_space<vmem>>, vector<1x8xf32>
    %20 = arith.subf %17, %18 : vector<1x8xf32>
    %21 = math.exp %20 : vector<1x8xf32>
    %22 = arith.mulf %19, %21 : vector<1x8xf32>
    %23 = vector.broadcast %18 : vector<1x8xf32> to vector<8x8xf32>
    %24 = arith.subf %2, %23 : vector<8x8xf32>
    %25 = math.exp %24 : vector<8x8xf32>
    %cst_10 = arith.constant dense<0.000000e+00> : vector<8xf32>
    %26 = vector.multi_reduction <add>, %25, %cst_10 [0] : vector<8x8xf32> to vector<8xf32>
    %27 = vector.shape_cast %26 : vector<8xf32> to vector<1x8xf32>
    %28 = arith.addf %22, %27 : vector<1x8xf32>
    %c0_11 = arith.constant 0 : index
    %c0_12 = arith.constant 0 : index
    %29 = vector.load %arg7[%c0_11, %c0_12] : memref<1x8xf32, #tpu.memory_space<vmem>>, vector<1x8xf32>
    tpu.vector_store %arg7[%c0_11, %c0_12], %28 {strides = array<i32>} : memref<1x8xf32, #tpu.memory_space<vmem>>, vector<1x8xf32>,
    %30 = arith.cmpf ogt, %8, %17 : vector<1x8xf32>
    %c8_i32_13 = arith.constant 8 : i32
    %31 = arith.muli %arg1, %c8_i32_13 : i32
    %32 = vector.broadcast %31 : i32 to vector<1x8xi32>
    %33 = arith.addi %16, %32 : vector<1x8xi32>
    %c0_14 = arith.constant 0 : index
    %c0_15 = arith.constant 0 : index
    %34 = vector.load %arg9[%c0_14, %c0_15] : memref<1x8xi32, #tpu.memory_space<vmem>>, vector<1x8xi32>
    %35 = arith.select %30, %33, %34 : vector<1x8xi1>, vector<1x8xi32>
    %c0_16 = arith.constant 0 : index
    %c0_17 = arith.constant 0 : index
    %36 = vector.load %arg9[%c0_16, %c0_17] : memref<1x8xi32, #tpu.memory_space<vmem>>, vector<1x8xi32>
    tpu.vector_store %arg9[%c0_16, %c0_17], %35 {strides = array<i32>} : memref<1x8xi32, #tpu.memory_space<vmem>>, vector<1x8xi32>,
    %c0_18 = arith.constant 0 : index
    %c0_19 = arith.constant 0 : index
    %37 = vector.load %arg6[%c0_18, %c0_19] : memref<1x8xf32, #tpu.memory_space<vmem>>, vector<1x8xf32>
    tpu.vector_store %arg6[%c0_18, %c0_19], %18 {strides = array<i32>} : memref<1x8xf32, #tpu.memory_space<vmem>>, vector<1x8xf32>,
    %38 = arith.cmpi eq, %arg1, %arg0 : i32
    %39 = arith.extui %38 : i1 to i32
    %c0_i32_20 = arith.constant 0 : i32
    %40 = arith.cmpi ne, %39, %c0_i32_20 : i32
    scf.if %40 {
      %44 = tpu.iota {dimensions = array<i32: 1>} : vector<1x8xi32>
      %45 = vector.broadcast %6 : vector<8x1xi32> to vector<8x8xi32>
      %46 = vector.broadcast %44 : vector<1x8xi32> to vector<8x8xi32>
      %47 = arith.cmpi eq, %45, %46 : vector<8x8xi32>
      %cst_23 = arith.constant 0.000000e+00 : f32
      %48 = vector.broadcast %cst_23 : f32 to vector<8x8xf32>
      %49 = arith.select %47, %2, %48 : vector<8x8xi1>, vector<8x8xf32>
      %cst_24 = arith.constant dense<0.000000e+00> : vector<8xf32>
      %50 = vector.multi_reduction <add>, %49, %cst_24 [0] : vector<8x8xf32> to vector<8xf32>
      %51 = vector.shape_cast %50 : vector<8xf32> to vector<1x8xf32>
      %c0_25 = arith.constant 0 : index
      %c0_26 = arith.constant 0 : index
      %52 = vector.load %arg8[%c0_25, %c0_26] : memref<1x8xf32, #tpu.memory_space<vmem>>, vector<1x8xf32>
      tpu.vector_store %arg8[%c0_25, %c0_26], %51 {strides = array<i32>} : memref<1x8xf32, #tpu.memory_space<vmem>>, vector<1x8xf32>,
    } else {
    }
    %c0_i32_21 = arith.constant 0 : i32
    %41 = arith.cmpi eq, %arg1, %c0_i32_21 : i32
    %42 = arith.extui %41 : i1 to i32
    %c0_i32_22 = arith.constant 0 : i32
    %43 = arith.cmpi ne, %42, %c0_i32_22 : i32
    scf.if %43 {
      %c0_23 = arith.constant 0 : index
      %c0_24 = arith.constant 0 : index
      %44 = vector.load %arg6[%c0_23, %c0_24] : memref<1x8xf32, #tpu.memory_space<vmem>>, vector<1x8xf32>
      %c0_25 = arith.constant 0 : index
      %c0_26 = arith.constant 0 : index
      %45 = vector.load %arg7[%c0_25, %c0_26] : memref<1x8xf32, #tpu.memory_space<vmem>>, vector<1x8xf32>
      %46 = math.log %45 : vector<1x8xf32>
      %47 = arith.addf %44, %46 : vector<1x8xf32>
      %c0_27 = arith.constant 0 : index
      %c0_28 = arith.constant 0 : index
      %48 = vector.load %arg8[%c0_27, %c0_28] : memref<1x8xf32, #tpu.memory_space<vmem>>, vector<1x8xf32>
      %49 = arith.subf %47, %48 : vector<1x8xf32>
      %c0_29 = arith.constant 0 : index
      %c0_30 = arith.constant 0 : index
      %c0_31 = arith.constant 0 : index
      %50 = vector.load %arg4[%c0_29, %c0_30, %c0_31] : memref<1x1x8xf32, #tpu.memory_space<vmem>>, vector<1x1x8xf32>
      %51 = vector.shape_cast %50 : vector<1x1x8xf32> to vector<1x8xf32>
      %52 = vector.shape_cast %49 : vector<1x8xf32> to vector<1x1x8xf32>
      tpu.vector_store %arg4[%c0_29, %c0_30, %c0_31], %52 {strides = array<i32>} : memref<1x1x8xf32, #tpu.memory_space<vmem>>, vector<1x1x8xf32>,
      %53 = tpu.iota {dimensions = array<i32: 1>} : vector<1x8xi32>
      %c8_i32_32 = arith.constant 8 : i32
      %54 = arith.muli %arg0, %c8_i32_32 : i32
      %55 = vector.broadcast %54 : i32 to vector<1x8xi32>
      %56 = arith.addi %53, %55 : vector<1x8xi32>
      %c0_33 = arith.constant 0 : index
      %c0_34 = arith.constant 0 : index
      %57 = vector.load %arg9[%c0_33, %c0_34] : memref<1x8xi32, #tpu.memory_space<vmem>>, vector<1x8xi32>
      %58 = arith.cmpi eq, %57, %56 : vector<1x8xi32>
      %59 = arith.extui %58 : vector<1x8xi1> to vector<1x8xi32>
      %60 = arith.sitofp %59 : vector<1x8xi32> to vector<1x8xf32>
      %c0_35 = arith.constant 0 : index
      %c0_36 = arith.constant 0 : index
      %c0_37 = arith.constant 0 : index
      %61 = vector.load %arg5[%c0_35, %c0_36, %c0_37] : memref<1x1x8xf32, #tpu.memory_space<vmem>>, vector<1x1x8xf32>
      %62 = vector.shape_cast %61 : vector<1x1x8xf32> to vector<1x8xf32>
      %63 = vector.shape_cast %60 : vector<1x8xf32> to vector<1x1x8xf32>
      tpu.vector_store %arg5[%c0_35, %c0_36, %c0_37], %63 {strides = array<i32>} : memref<1x1x8xf32, #tpu.memory_space<vmem>>, vector<1x1x8xf32>,
    } else {
    }
    return
  }
  func.func @transform_0(%arg0: i32, %arg1: i32) -> (i32, i32) {
    %c0_i32 = arith.constant 0 : i32
    %c0_i32_0 = arith.constant 0 : i32
    return %arg0, %c0_i32 : i32, i32
  }
  func.func @transform_1(%arg0: i32, %arg1: i32) -> (i32, i32) {
    %c0_i32 = arith.constant 0 : i32
    %c0_i32_0 = arith.constant 0 : i32
    return %arg1, %c0_i32 : i32, i32
  }
  func.func @transform_2(%arg0: i32, %arg1: i32) -> (i32, i32, i32) {
    %c0_i32 = arith.constant 0 : i32
    %c0_i32_0 = arith.constant 0 : i32
    %c0_i32_1 = arith.constant 0 : i32
    return %arg0, %c0_i32, %c0_i32_0 : i32, i32, i32
  }
  func.func @transform_3(%arg0: i32, %arg1: i32) -> (i32, i32, i32) {
    %c0_i32 = arith.constant 0 : i32
    %c0_i32_0 = arith.constant 0 : i32
    %c0_i32_1 = arith.constant 0 : i32
    return %arg0, %c0_i32, %c0_i32_0 : i32, i32, i32
  }
}

</mosaic_0001>

<bundles_post_ra>
// kernel: tpu_custom_call.1
= control target key start
LH: loop header
LB: loop body
LE: loop exit
PB: predicated region body
PF: predicated region fallthrough
CT: control target
= control target key end

     0   :  { %9 = vsyncpa [#allocation7], 0  ;;  %s462_s0 = inlined_call_operand.hbm [shape: f32[8,32], index: 0, kind: input, shape index: {}]   ;;  %s463_s1 = inlined_call_operand.hbm [shape: f32[8,32], index: 1, kind: input, shape index: {}]   ;;  %s464_s2 = inlined_call_operand.hbm [shape: f32[1,1,8], index: 2, kind: output, shape index: {0}]   ;;  %s465_s3 = inlined_call_operand.hbm [shape: f32[1,1,8], index: 3, kind: output, shape index: {1}]  }
   0x1   :  { %10 = vsyncpa [#allocation10], 0 }
   0x2   :  { %11 = vsyncpa [#allocation8], 0 }
   0x3   :  { %12 = vsyncpa [#allocation13], 0  ;;  %s369_s12 = smov [#allocation6]   ;;  %s370_s14 = smov [#allocation9]  }
   0x4   :  { %s19_s13 = sshll.u32 %s369_s12, 4  ;;  %s29_s15 = sshll.u32 %s370_s14, 4  ;;  %s20_s13 = int_to_ptr.vmem [resolvable:$true] %s19_s13  ;;  %s30_s15 = int_to_ptr.vmem [resolvable:$true] %s29_s15 }
   0x5   :  { %s273_s18 = scalar_lea.hbm %s462_s0, 128 }
   0x6   :  { %p274_p0 = scmp.ne.s32.totalorder %s462_s0, %s273_s18  ;;  %p277_p1 = scmp.lt.u32.totalorder %s273_s18, %s462_s0 }
   0x8   :  { %p279_p2 = pnand %p277_p1, %p274_p0 }
   0xa   :  { %282 = shalt.err (!%p279_p2)
}
   0xb   :  { %s283_s23 = scalar_lea.vmem %s20_s13, 128  ;;  %p288_p4 = scmp.lt.s32.totalorder %s20_s13, %s20_s13 }
   0xc   :  { %p284_p3 = scmp.ne.s32.totalorder %s20_s13, %s283_s23  ;;  %p289_p5 = scmp.lt.s32.totalorder %s283_s23, %s283_s23 }
   0xe   :  { %p290_p6 = por %p289_p5, %p288_p4 }
  0x10   :  { %p291_p7 = pnand %p290_p6, %p284_p3 }
  0x12   :  { %294 = shalt.err (!%p291_p7)
}
  0x13   :  { %22 = dma.hbm_to_vmem [thread:$0]  %s462_s0, 128, %s20_s13, [#allocation7]  }
  0x14   :  { %s295_s28 = scalar_lea.hbm %s463_s1, 128 }
  0x15   :  { %p296_p8 = scmp.ne.s32.totalorder %s463_s1, %s295_s28  ;;  %p299_p9 = scmp.lt.u32.totalorder %s295_s28, %s463_s1 }
  0x17   :  { %p301_p10 = pnand %p299_p9, %p296_p8 }
  0x19   :  { %304 = shalt.err (!%p301_p10)
}
  0x1a   :  { %s305_s6 = scalar_lea.vmem %s30_s15, 128  ;;  %p310_p12 = scmp.lt.s32.totalorder %s30_s15, %s30_s15 }
  0x1b   :  { %p306_p11 = scmp.ne.s32.totalorder %s30_s15, %s305_s6  ;;  %p311_p13 = scmp.lt.s32.totalorder %s305_s6, %s305_s6 }
  0x1d   :  { %p312_p0 = por %p311_p13, %p310_p12 }
  0x1f   :  { %p313_p1 = pnand %p312_p0, %p306_p11 }
  0x21   :  { %316 = shalt.err (!%p313_p1)
}
  0x22   :  { %32 = dma.hbm_to_vmem [thread:$0]  %s463_s1, 128, %s30_s15, [#allocation10]  }
  0x23   :  { %361 = dma.done.wait [#allocation7], 128  }
  0x24   :  { %362 = vsyncadd [#allocation7], 4294967168 }
  0x25   :  { %363 = dma.done.wait [#allocation10], 128  }
  0x26   :  { %364 = vsyncadd [#allocation10], 4294967168  ;;  %vm122_vm0 = vcmask 57344   ;;  %v371_v0 = vmov 0.0   ;;  %vm372_vm1 = vmmov 0   ;;  %vm41_vm2 = vcmask 261120  }
  0x27   :  { %254 = vmatprep.subr.mxu0 %v371_v0  ;;  %124 = vst.msk [vmem:[#allocation3] sm:$0x1] %vm122_vm0, %v371_v0  ;;  %256 = vmatprep.mubr.msk.f32.mxu0 %vm372_vm1, %v371_v0  ;;  %v40_v1 = vld [vmem:[#allocation6] sm:$0xff]  ;;  %v39_v2 = vld [vmem:[#allocation9] sm:$0xff]  ;;  %v373_v3 = vmov -inf   ;;  %v374_v4 = vmov 0   ;;  %v126_v5 = vlaneseq }
  0x28   :  { %255 = vmatpush3.xpose.msk.msra.mxu0 %vm41_vm2, %v40_v1  ;;  %123 = vst.msk [vmem:[#allocation2] sm:$0x1] %vm122_vm0, %v373_v3  ;;  %125 = vst.msk [vmem:[#allocation5] sm:$0x1] %vm122_vm0, %v374_v4  ;;  %vm128_vm3 = vcmask 64512   ;;  %s375_s1 = smov [#allocation12]  }
  0x29   :  { %v127_v6 = vshrl.u32 %v126_v5, 7  ;;  %v187_v7 = vand.u32 127, %v126_v5  ;;  %s235_s8 = sshll.u32 %s375_s1, 4  ;;  %s236_s8 = int_to_ptr.vmem [resolvable:$true] %s235_s8 }
  0x2a   :  { %s317_s9 = scalar_lea.vmem %s236_s8, 16  ;;  %s321_s10 = scalar_lea.vmem %s236_s8, 32 }
  0x2b   :  { %257 = vmatmul.mubr.msk.f32.vlgmr.msra.gmra.mrb[0].mxu0 %vm41_vm2, %v39_v2  ;;  %vm188_vm4 = vcmp.eq.s32.totalorder %v127_v6, %v187_v7  ;;  %v158_v25 = vsub.s32 0, %v127_v6  ;;  %p318_p2 = scmp.ne.s32.totalorder %s236_s8, %s317_s9  ;;  %p322_p3 = scmp.lt.s32.totalorder %s236_s8, %s236_s8 }
  0x2c   :  { %p323_p4 = scmp.lt.s32.totalorder %s321_s10, %s317_s9 }
  0x2e   :  { %v150_v52 = vld [vmem:[#allocation3] sm:$0x1]  ;;  %p324_p5 = por %p323_p4, %p322_p3 }
  0x2f   :  { %v148_v22 = vld [vmem:[#allocation2] sm:$0x1]  ;;  %v178_v39 = vld [vmem:[#allocation5] sm:$0x1] }
  0x30   :  { %p325_p6 = pnand %p324_p5, %p318_p2 }
  0xfe   :  { %v114_v8 = vpop.f32.mrb[0].mxu0 }
  0xff   :  { %v129_v9 = vsel %vm128_vm3, %v114_v8, -inf  ;;  %v189_v10 = vsel %vm188_vm4, %v114_v8, 0.0  ;;  %v258_v11 = vpop.f32.mrb[1].mxu0 }
 0x100   :  { %v130_v12 = vrot.slane %v129_v9, 4  ;;  %v190_v13 = vsel %vm128_vm3, %v189_v10, 0.0 }
 0x101   :  { %v191_v14 = vrot.slane %v190_v13, 4 }
 0x102   :  { %v131_v15 = vmax.f32 %v129_v9, %v130_v12 }
 0x103   :  { %v192_v16 = vadd.f32 %v191_v14, %v190_v13 }
 0x104   :  { %v132_v17 = vrot.slane %v131_v15, 2 }
 0x105   :  { %v193_v18 = vrot.slane %v192_v16, 2 }
 0x106   :  { %v133_v19 = vmax.f32 %v131_v15, %v132_v17 }
 0x107   :  { %v194_v20 = vadd.f32 %v193_v18, %v192_v16 }
 0x108   :  { %v134_v21 = vrot.slane %v133_v19, 1 }
 0x109   :  { %v195_v23 = vrot.slane %v194_v20, 1 }
 0x10a   :  { %v135_v24 = vmax.f32 %v133_v19, %v134_v21 }
 0x10b   :  { %v196_v26 = vadd.f32 %v195_v23, %v194_v20 }
 0x10c   :  { %vm136_vm5 = vcmp.eq.f32.partialorder %v114_v8, %v135_v24  ;;  %v149_v27 = vmax.f32 %v148_v22, %v135_v24  ;;  %vm174_vm9 = vcmp.gt.f32.partialorder %v135_v24, %v148_v22 }
 0x10d   :  { %v137_v28 = vsel %vm136_vm5, %v127_v6, 8  ;;  %197 = vst.msk [vmem:[#allocation4] sm:$0x1] %vm122_vm0, %v196_v26 }
 0x10e   :  { %v138_v29 = vsel %vm128_vm3, %v137_v28, 2147483647  ;;  %v159_v30 = vrot.slane %v149_v27, %v158_v25  ;;  %181 = vst.msk [vmem:[#allocation2] sm:$0x1] %vm122_vm0, %v149_v27  ;;  %v151_v36 = vsub.f32 %v148_v22, %v149_v27 }
 0x10f   :  { %v139_v31 = vrot.slane %v138_v29, 4 }
 0x110   :  { %v161_v32 = vsub.f32 %v114_v8, %v159_v30  ;;  %v152_v40 = vmul.f32 1.442695, %v151_v36 }
 0x111   :  { %vm140_vm6 = vcmp.lt.s32.totalorder %v138_v29, %v139_v31 }
 0x112   :  { %v141_v33 = vsel %vm140_vm6, %v138_v29, %v139_v31  ;;  %v162_v34 = vmul.f32 1.442695, %v161_v32 }
 0x113   :  { %v142_v35 = vrot.slane %v141_v33, 2 }
 0x114   :  { %267 = vpow2.f32 %v162_v34 }
 0x115   :  { %vm143_vm7 = vcmp.lt.s32.totalorder %v141_v33, %v142_v35  ;;  %269 = vpow2.f32 %v152_v40 }
 0x116   :  { %v144_v37 = vsel %vm143_vm7, %v141_v33, %v142_v35 }
 0x117   :  { %v145_v38 = vrot.slane %v144_v37, 1 }
 0x119   :  { %vm146_vm8 = vcmp.lt.s32.totalorder %v144_v37, %v145_v38 }
 0x11a   :  { %v147_v41 = vsel %vm146_vm8, %v144_v37, %v145_v38 }
 0x11b   :  { %v179_v42 = vsel %vm174_vm9, %v147_v41, %v178_v39 }
 0x11c   :  { %180 = vst.msk [vmem:[#allocation5] sm:$0x1] %vm122_vm0, %v179_v42 }
 0x11e   :  { %v268_v43 = vpop.eup %267 }
 0x11f   :  { %v164_v44 = vsel %vm128_vm3, %v268_v43, 0.0  ;;  %v270_v51 = vpop.eup %269 }
 0x120   :  { %v165_v45 = vrot.slane %v164_v44, 4 }
 0x122   :  { %v166_v46 = vadd.f32 %v165_v45, %v164_v44 }
 0x123   :  { %v214_v47 = vld [vmem:[#allocation5] sm:$0x1] }
 0x124   :  { %v167_v48 = vrot.slane %v166_v46, 2  ;;  %vm215_vm10 = vcmp.eq.s32.totalorder %v214_v47, %v187_v7 }
 0x125   :  { %v251_v49 = vsel %vm215_vm10, 1.0, %v371_v0 }
 0x126   :  { %v168_v50 = vadd.f32 %v167_v48, %v166_v46  ;;  %218 = vst.msk [vmem:[#allocation12] sm:$0x1] %vm122_vm0, %v251_v49 }
 0x127   :  { %328 = shalt.err (!%p325_p6)
}
 0x128   :  { %s329_s13 = scalar_lea.hbm %s465_s3, 16 }
 0x129   :  { %p330_p7 = scmp.ne.s32.totalorder %s465_s3, %s329_s13  ;;  %p333_p8 = scmp.lt.u32.totalorder %s329_s13, %s465_s3 }
 0x12b   :  { %p335_p9 = pnand %p333_p8, %p330_p7 }
 0x12d   :  { %338 = shalt.err (!%p335_p9)
}
 0x12e   :  { %238 = dma.vmem_to_hbm [thread:$0]  %s236_s8, 16, %s465_s3, [#allocation13]   ;;  %v169_v53 = vrot.slane %v168_v50, 1  ;;  %v154_v54 = vmul.f32 %v270_v51, %v150_v52  ;;  %v201_v60 = vld [vmem:[#allocation2] sm:$0x1] }
 0x12f   :  { %s376_s20 = smov [#allocation11]   ;;  %v206_v62 = vld [vmem:[#allocation4] sm:$0x1] }
 0x130   :  { %v170_v55 = vadd.f32 %v169_v53, %v168_v50  ;;  %s225_s21 = sshll.u32 %s376_s20, 4  ;;  %s226_s21 = int_to_ptr.vmem [resolvable:$true] %s225_s21 }
 0x131   :  { %s339_s3 = scalar_lea.vmem %s226_s21, 16  ;;  %s343_s22 = scalar_lea.vmem %s226_s21, 32 }
 0x132   :  { %v171_v56 = vadd.f32 %v170_v55, %v154_v54  ;;  %p340_p10 = scmp.ne.s32.totalorder %s226_s21, %s339_s3  ;;  %p344_p11 = scmp.lt.s32.totalorder %s226_s21, %s226_s21 }
 0x133   :  { %p345_p12 = scmp.lt.s32.totalorder %s343_s22, %s339_s3 }
 0x134   :  { %173 = vst.msk [vmem:[#allocation3] sm:$0x1] %vm122_vm0, %v171_v56 }
 0x135   :  { %p346_p13 = por %p345_p12, %p344_p11 }
 0x137   :  { %p347_p0 = pnand %p346_p13, %p340_p10 }
 0x13b   :  { %v202_v57 = vld [vmem:[#allocation3] sm:$0x1] }
 0x13c   :  { %271 = vlog2.f32 %v202_v57 }
 0x146   :  { %v272_v58 = vpop.eup %271 }
 0x147   :  { %v204_v59 = vmul.f32 0.6931472, %v272_v58 }
 0x149   :  { %v205_v61 = vadd.f32 %v204_v59, %v201_v60 }
 0x14b   :  { %v207_v63 = vsub.f32 %v205_v61, %v206_v62 }
 0x14d   :  { %208 = vst.msk [vmem:[#allocation11] sm:$0x1] %vm122_vm0, %v207_v63 }
 0x14e   :  { %350 = shalt.err (!%p347_p0)
}
 0x14f   :  { %s351_s25 = scalar_lea.hbm %s464_s2, 16 }
 0x150   :  { %p352_p1 = scmp.ne.s32.totalorder %s464_s2, %s351_s25  ;;  %p355_p2 = scmp.lt.u32.totalorder %s351_s25, %s464_s2 }
 0x152   :  { %p357_p3 = pnand %p355_p2, %p352_p1 }
 0x154   :  { %360 = shalt.err (!%p357_p3)
}
 0x155   :  { %228 = dma.vmem_to_hbm [thread:$0]  %s226_s21, 16, %s464_s2, [#allocation8]  }
 0x156   :  { %365 = dma.done.wait [#allocation8], 16  }
 0x157   :  { %366 = vsyncadd [#allocation8], 4294967280 }
 0x158   :  { %367 = dma.done.wait [#allocation13], 16  }
 0x159   :  { %368 = vsyncadd [#allocation13], 4294967280 }
 0x15a   :  { %245 = vsyncpa [#allocation7], 1 }
 0x15b   :  { %246 = vsyncpa [#allocation10], 1 }
 0x15c   :  { %247 = vsyncpa [#allocation8], 1 }
 0x15d   :  { %248 = vsyncpa [#allocation13], 1 }

</bundles_post_ra>
